<compile_context>
chip_gen: v7x
topology: tpu7x:2x2x1
jax: 0.10.0
libtpu: 0.0.40
codegen_flags: <defaults>
</compile_context>

<pallas_src>
import functools

import jax
import jax.numpy as jnp
from jax.experimental import pallas as pl
from jax.experimental.pallas import tpu as pltpu


def _round_up(n, m):
    return ((n + m - 1) // m) * m


def _mlp_kernel(x_ref, w1_ref, b1_ref, w2_ref, b2_ref, w3_ref, b3_ref, o_ref):
    # Whole 3-layer MLP fused in one VMEM-resident kernel.
    # x / weights are bf16 (MXU operands), accumulation + bias + ReLU in f32.
    x = x_ref[...]                                                     # (bb, Hp) bf16
    h1 = jnp.dot(x, w1_ref[...], preferred_element_type=jnp.float32) + b1_ref[...]
    h1 = jnp.maximum(h1, 0.0).astype(jnp.bfloat16)                     # ReLU (VPU, f32) -> bf16 for MXU
    h2 = jnp.dot(h1, w2_ref[...], preferred_element_type=jnp.float32) + b2_ref[...]
    h2 = jnp.maximum(h2, 0.0).astype(jnp.bfloat16)
    out = jnp.dot(h2, w3_ref[...], preferred_element_type=jnp.float32) + b3_ref[...]
    o_ref[...] = out.astype(o_ref.dtype)                               # (bb, 128) lane-dense store


@functools.partial(jax.jit, static_argnames=("block_b",))
def generator_forward(x, params, *, block_b=512):
    """Forward pass of Generator. x: (B, H) float32 -> (B, 3) float32."""
    w1, b1, w2, b2, w3, b3 = params
    B, H = x.shape

    OUT = 3
    OUT_PAD = 128                      # lane-dense output tile width
    Hp = _round_up(H, 128)             # lane-dense K dim for the x stream

    # Batch tile: as large as requested, but never larger than the (8-aligned)
    # batch so tiny inputs don't pay for a mostly-empty tile. Sublane-aligned.
    bb = min(block_b, _round_up(B, 8))
    bb = max(8, _round_up(bb, 8))
    Bp = _round_up(B, bb)              # pad batch instead of asserting divisibility

    bf = jnp.bfloat16
    # Zero-pad + bf16-cast the MXU operands (zeros contribute nothing to dots).
    xp = jnp.zeros((Bp, Hp), bf).at[:B, :H].set(x.astype(bf))
    w1p = jnp.zeros((Hp, 64), bf).at[:H, :].set(w1.astype(bf))
    w2b = w2.astype(bf)
    w3p = jnp.zeros((64, OUT_PAD), bf).at[:, :OUT].set(w3.astype(bf))
    b3p = jnp.zeros((1, OUT_PAD), jnp.float32).at[:, :OUT].set(b3)

    grid = (Bp // bb,)

    out = pl.pallas_call(
        _mlp_kernel,
        out_shape=jax.ShapeDtypeStruct((Bp, OUT_PAD), jnp.float32),
        grid=grid,
        in_specs=[
            # x: tiled along batch
            pl.BlockSpec((bb, Hp), lambda i: (i, 0)),
            # weights / biases: full arrays, resident for every grid step
            pl.BlockSpec((Hp, 64), lambda i: (0, 0)),
            pl.BlockSpec((1, 64), lambda i: (0, 0)),
            pl.BlockSpec((64, 64), lambda i: (0, 0)),
            pl.BlockSpec((1, 64), lambda i: (0, 0)),
            pl.BlockSpec((64, OUT_PAD), lambda i: (0, 0)),
            pl.BlockSpec((1, OUT_PAD), lambda i: (0, 0)),
        ],
        out_specs=pl.BlockSpec((bb, OUT_PAD), lambda i: (i, 0)),
        compiler_params=pltpu.CompilerParams(
            dimension_semantics=("parallel",),      # megacore-shard batch tiles
            vmem_limit_bytes=64 * 1024 * 1024,      # headroom above 32 MiB scoped default
        ),
    )(xp, w1p, b1, w2b, b2, w3p, b3p)

    # Padded rows/lanes never leak into the result.
    return out[:B, :OUT]


def init_params(key, hidden_param_num):
    """Deterministic init matching the module's shapes (weights as (in, out))."""
    ks = jax.random.split(key, 6)

    def lin(kw, kb, fan_in, fan_out):
        bound = 1.0 / (fan_in ** 0.5)
        w = jax.random.uniform(kw, (fan_in, fan_out), jnp.float32, -bound, bound)
        b = jax.random.uniform(kb, (1, fan_out), jnp.float32, -bound, bound)
        return w, b

    w1, b1 = lin(ks[0], ks[1], hidden_param_num, 64)
    w2, b2 = lin(ks[2], ks[3], 64, 64)
    w3, b3 = lin(ks[4], ks[5], 64, 3)
    return (w1, b1, w2, b2, w3, b3)


def generator_forward_ref(x, params):
    """Pure-JAX f32 reference of the PyTorch forward."""
    w1, b1, w2, b2, w3, b3 = params
    h1 = jnp.maximum(x @ w1 + b1, 0.0)
    h2 = jnp.maximum(h1 @ w2 + b2, 0.0)
    return h2 @ w3 + b3


def generator_forward_ref_bf16(x, params):
    """Reference mirroring the kernel's bf16-MXU-input / f32-accumulate math."""
    w1, b1, w2, b2, w3, b3 = params
    bf = jnp.bfloat16
    h1 = jnp.dot(x.astype(bf), w1.astype(bf), preferred_element_type=jnp.float32) + b1
    h1 = jnp.maximum(h1, 0.0).astype(bf)
    h2 = jnp.dot(h1, w2.astype(bf), preferred_element_type=jnp.float32) + b2
    h2 = jnp.maximum(h2, 0.0).astype(bf)
    return jnp.dot(h2, w3.astype(bf), preferred_element_type=jnp.float32) + b3


if __name__ == "__main__":
    key = jax.random.PRNGKey(0)
    k_param, k_x, k_x2 = jax.random.split(key, 3)

    hidden_param_num = 32   # `hidden_param_num` ctor arg
    batch = 8

    params = init_params(k_param, hidden_param_num)
    x = jax.random.normal(k_x, (batch, hidden_param_num), dtype=jnp.float32)

    out = generator_forward(x, params)
    out = jax.block_until_ready(out)
    assert out.shape == (batch, 3), out.shape

    # Tight check vs. a reference that mirrors the kernel's bf16 arithmetic.
    ref_bf16 = generator_forward_ref_bf16(x, params)
    assert jnp.allclose(out, ref_bf16, atol=1e-3, rtol=1e-3), "mismatch vs bf16-matched ref"
    # Loose sanity check vs. the full-f32 reference (bf16 MXU inputs).
    ref_f32 = generator_forward_ref(x, params)
    assert jnp.allclose(out, ref_f32, atol=5e-2, rtol=5e-2), "mismatch vs f32 ref"

    # Exercise the non-divisible / padded-batch path as well.
    batch2 = 300
    x2 = jax.random.normal(k_x2, (batch2, hidden_param_num), dtype=jnp.float32)
    out2 = jax.block_until_ready(generator_forward(x2, params))
    assert out2.shape == (batch2, 3), out2.shape
    assert jnp.allclose(out2, generator_forward_ref_bf16(x2, params), atol=1e-3, rtol=1e-3)

    print("KERNEL_OK")
</pallas_src>

<mosaic_0001>
module attributes {stable_mosaic.version = 11 : i64} {
  func.func @_mlp_kernel(%arg0: i32, %arg1: memref<8x128xbf16, #tpu.memory_space<vmem>>, %arg2: memref<128x64xbf16, #tpu.memory_space<vmem>>, %arg3: memref<1x64xf32, #tpu.memory_space<vmem>>, %arg4: memref<64x64xbf16, #tpu.memory_space<vmem>>, %arg5: memref<1x64xf32, #tpu.memory_space<vmem>>, %arg6: memref<64x128xbf16, #tpu.memory_space<vmem>>, %arg7: memref<1x128xf32, #tpu.memory_space<vmem>>, %arg8: memref<8x128xf32, #tpu.memory_space<vmem>>) attributes {dimension_semantics = [#tpu.dimension_semantics<parallel>], iteration_bounds = array<i64: 1>, scalar_prefetch = 0 : i64, scratch_operands = 0 : i64, tpu.core_type = #tpu.core_type<tc>, window_params = [{transform_indices = @transform_0, window_bounds = array<i64: 8, 128>}, {pipeline_mode = #tpu.pipeline_mode<synchronous>, transform_indices = @transform_1, window_bounds = array<i64: 128, 64>}, {pipeline_mode = #tpu.pipeline_mode<synchronous>, transform_indices = @transform_2, window_bounds = array<i64: 1, 64>}, {pipeline_mode = #tpu.pipeline_mode<synchronous>, transform_indices = @transform_3, window_bounds = array<i64: 64, 64>}, {pipeline_mode = #tpu.pipeline_mode<synchronous>, transform_indices = @transform_4, window_bounds = array<i64: 1, 64>}, {pipeline_mode = #tpu.pipeline_mode<synchronous>, transform_indices = @transform_5, window_bounds = array<i64: 64, 128>}, {pipeline_mode = #tpu.pipeline_mode<synchronous>, transform_indices = @transform_6, window_bounds = array<i64: 1, 128>}, {transform_indices = @transform_7, window_bounds = array<i64: 8, 128>}]} {
    %c0 = arith.constant 0 : index
    %c0_0 = arith.constant 0 : index
    %0 = vector.load %arg1[%c0, %c0_0] : memref<8x128xbf16, #tpu.memory_space<vmem>>, vector<8x128xbf16>
    %c0_1 = arith.constant 0 : index
    %c0_2 = arith.constant 0 : index
    %1 = vector.load %arg2[%c0_1, %c0_2] : memref<128x64xbf16, #tpu.memory_space<vmem>>, vector<128x64xbf16>
    %cst = arith.constant dense<0.000000e+00> : vector<8x64xf32>
    %2 = tpu.matmul %0, %1, %cst {dimension_numbers = #tpu.dot_dimension_numbers<[1], [0], [0], [1], [0, 0, 1, 1], [], []>} : vector<8x128xbf16>, vector<128x64xbf16>, vector<8x64xf32> -> vector<8x64xf32>
    %c0_3 = arith.constant 0 : index
    %c0_4 = arith.constant 0 : index
    %3 = vector.load %arg3[%c0_3, %c0_4] : memref<1x64xf32, #tpu.memory_space<vmem>>, vector<1x64xf32>
    %4 = vector.broadcast %3 : vector<1x64xf32> to vector<8x64xf32>
    %5 = arith.addf %2, %4 : vector<8x64xf32>
    %cst_5 = arith.constant 0.000000e+00 : f32
    %6 = vector.broadcast %cst_5 : f32 to vector<8x64xf32>
    %7 = arith.maximumf %5, %6 : vector<8x64xf32>
    %8 = arith.truncf %7 : vector<8x64xf32> to vector<8x64xbf16>
    %c0_6 = arith.constant 0 : index
    %c0_7 = arith.constant 0 : index
    %9 = vector.load %arg4[%c0_6, %c0_7] : memref<64x64xbf16, #tpu.memory_space<vmem>>, vector<64x64xbf16>
    %cst_8 = arith.constant dense<0.000000e+00> : vector<8x64xf32>
    %10 = tpu.matmul %8, %9, %cst_8 {dimension_numbers = #tpu.dot_dimension_numbers<[1], [0], [0], [1], [0, 0, 1, 1], [], []>} : vector<8x64xbf16>, vector<64x64xbf16>, vector<8x64xf32> -> vector<8x64xf32>
    %c0_9 = arith.constant 0 : index
    %c0_10 = arith.constant 0 : index
    %11 = vector.load %arg5[%c0_9, %c0_10] : memref<1x64xf32, #tpu.memory_space<vmem>>, vector<1x64xf32>
    %12 = vector.broadcast %11 : vector<1x64xf32> to vector<8x64xf32>
    %13 = arith.addf %10, %12 : vector<8x64xf32>
    %cst_11 = arith.constant 0.000000e+00 : f32
    %14 = vector.broadcast %cst_11 : f32 to vector<8x64xf32>
    %15 = arith.maximumf %13, %14 : vector<8x64xf32>
    %16 = arith.truncf %15 : vector<8x64xf32> to vector<8x64xbf16>
    %c0_12 = arith.constant 0 : index
    %c0_13 = arith.constant 0 : index
    %17 = vector.load %arg6[%c0_12, %c0_13] : memref<64x128xbf16, #tpu.memory_space<vmem>>, vector<64x128xbf16>
    %cst_14 = arith.constant dense<0.000000e+00> : vector<8x128xf32>
    %18 = tpu.matmul %16, %17, %cst_14 {dimension_numbers = #tpu.dot_dimension_numbers<[1], [0], [0], [1], [0, 0, 1, 1], [], []>} : vector<8x64xbf16>, vector<64x128xbf16>, vector<8x128xf32> -> vector<8x128xf32>
    %c0_15 = arith.constant 0 : index
    %c0_16 = arith.constant 0 : index
    %19 = vector.load %arg7[%c0_15, %c0_16] : memref<1x128xf32, #tpu.memory_space<vmem>>, vector<1x128xf32>
    %20 = vector.broadcast %19 : vector<1x128xf32> to vector<8x128xf32>
    %21 = arith.addf %18, %20 : vector<8x128xf32>
    %c0_17 = arith.constant 0 : index
    %c0_18 = arith.constant 0 : index
    %22 = vector.load %arg8[%c0_17, %c0_18] : memref<8x128xf32, #tpu.memory_space<vmem>>, vector<8x128xf32>
    tpu.vector_store %arg8[%c0_17, %c0_18], %21 {strides = array<i32>} : memref<8x128xf32, #tpu.memory_space<vmem>>, vector<8x128xf32>,
    return
  }
  func.func @transform_0(%arg0: i32) -> (i32, i32) {
    %c0_i32 = arith.constant 0 : i32
    %c0_i32_0 = arith.constant 0 : i32
    return %arg0, %c0_i32 : i32, i32
  }
  func.func @transform_1(%arg0: i32) -> (i32, i32) {
    %c0_i32 = arith.constant 0 : i32
    %c0_i32_0 = arith.constant 0 : i32
    %c0_i32_1 = arith.constant 0 : i32
    return %c0_i32, %c0_i32_0 : i32, i32
  }
  func.func @transform_2(%arg0: i32) -> (i32, i32) {
    %c0_i32 = arith.constant 0 : i32
    %c0_i32_0 = arith.constant 0 : i32
    %c0_i32_1 = arith.constant 0 : i32
    return %c0_i32, %c0_i32_0 : i32, i32
  }
  func.func @transform_3(%arg0: i32) -> (i32, i32) {
    %c0_i32 = arith.constant 0 : i32
    %c0_i32_0 = arith.constant 0 : i32
    %c0_i32_1 = arith.constant 0 : i32
    return %c0_i32, %c0_i32_0 : i32, i32
  }
  func.func @transform_4(%arg0: i32) -> (i32, i32) {
    %c0_i32 = arith.constant 0 : i32
    %c0_i32_0 = arith.constant 0 : i32
    %c0_i32_1 = arith.constant 0 : i32
    return %c0_i32, %c0_i32_0 : i32, i32
  }
  func.func @transform_5(%arg0: i32) -> (i32, i32) {
    %c0_i32 = arith.constant 0 : i32
    %c0_i32_0 = arith.constant 0 : i32
    %c0_i32_1 = arith.constant 0 : i32
    return %c0_i32, %c0_i32_0 : i32, i32
  }
  func.func @transform_6(%arg0: i32) -> (i32, i32) {
    %c0_i32 = arith.constant 0 : i32
    %c0_i32_0 = arith.constant 0 : i32
    %c0_i32_1 = arith.constant 0 : i32
    return %c0_i32, %c0_i32_0 : i32, i32
  }
  func.func @transform_7(%arg0: i32) -> (i32, i32) {
    %c0_i32 = arith.constant 0 : i32
    %c0_i32_0 = arith.constant 0 : i32
    return %arg0, %c0_i32 : i32, i32
  }
}

</mosaic_0001>

<bundles_post_ra>
// kernel: generator_forward.1
= control target key start
LH: loop header
LB: loop body
LE: loop exit
PB: predicated region body
PF: predicated region fallthrough
CT: control target
= control target key end

     0   :  { %12 = vsyncpa [#allocation3], 0  ;;  %s875_s0 = inlined_call_operand.hbm [shape: bf16[8,128], index: 0, kind: input, shape index: {}]   ;;  %s876_s1 = inlined_call_operand.hbm [shape: bf16[128,64], index: 1, kind: input, shape index: {}]   ;;  %s877_s2 = inlined_call_operand.hbm [shape: f32[1,64], index: 2, kind: input, shape index: {}]   ;;  %s878_s3 = inlined_call_operand.hbm [shape: bf16[64,64], index: 3, kind: input, shape index: {}]   ;;  %s879_s4 = inlined_call_operand.hbm [shape: f32[1,64], index: 4, kind: input, shape index: {}]   ;;  %s880_s5 = inlined_call_operand.hbm [shape: bf16[64,128], index: 5, kind: input, shape index: {}]   ;;  %s881_s6 = inlined_call_operand.hbm [shape: f32[1,128], index: 6, kind: input, shape index: {}]   ;;  %s882_s7 = inlined_call_operand.hbm [shape: f32[8,128], index: 7, kind: output, shape index: {}]  }
   0x1   :  { %13 = vsyncpa [#allocation6], 0 }
   0x2   :  { %14 = vsyncpa [#allocation9], 0 }
   0x3   :  { %15 = vsyncpa [#allocation12], 0 }
   0x4   :  { %16 = vsyncpa [#allocation4], 0  ;;  %s713_s24 = smov [#allocation5]   ;;  %s527_s28 = scalar_lea.hbm %s876_s1, 1024 }
   0x5   :  { %s32_s25 = sshll.u32 %s713_s24, 4  ;;  %p528_p0 = scmp.ne.s32.totalorder %s876_s1, %s527_s28  ;;  %s33_s25 = int_to_ptr.vmem [resolvable:$true] %s32_s25 }
   0x6   :  { %p531_p1 = scmp.lt.u32.totalorder %s527_s28, %s876_s1 }
   0x8   :  { %p533_p2 = pnand %p531_p1, %p528_p0 }
   0xa   :  { %536 = shalt.err (!%p533_p2)
}
   0xb   :  { %s537_s10 = scalar_lea.vmem %s33_s25, 1024  ;;  %p542_p4 = scmp.lt.s32.totalorder %s33_s25, %s33_s25 }
   0xc   :  { %p538_p3 = scmp.ne.s32.totalorder %s33_s25, %s537_s10  ;;  %p543_p5 = scmp.lt.s32.totalorder %s537_s10, %s537_s10 }
   0xe   :  { %p544_p6 = por %p543_p5, %p542_p4 }
  0x10   :  { %p545_p7 = pnand %p544_p6, %p538_p3 }
  0x12   :  { %548 = shalt.err (!%p545_p7)
}
  0x13   :  { %s714_s11 = smov 64   ;;  %s715_s12 = smov 4  }
  0x14   :  { %38 = dma.hbm_to_vmem [thread:$0]  %s876_s1, 1024, %s33_s25, [#allocation6], %s714_s11, %s714_s11, %s715_s12  }
  0x15   :  { %s716_s15 = smov [#allocation8]   ;;  %s717_s17 = smov [#allocation11]  }
  0x16   :  { %s54_s16 = sshll.u32 %s716_s15, 4  ;;  %s76_s18 = sshll.u32 %s717_s17, 4  ;;  %s55_s16 = int_to_ptr.vmem [resolvable:$true] %s54_s16  ;;  %s77_s18 = int_to_ptr.vmem [resolvable:$true] %s76_s18 }
  0x17   :  { %s549_s21 = scalar_lea.hbm %s878_s3, 512 }
  0x18   :  { %p550_p8 = scmp.ne.s32.totalorder %s878_s3, %s549_s21  ;;  %p553_p9 = scmp.lt.u32.totalorder %s549_s21, %s878_s3 }
  0x1a   :  { %p555_p10 = pnand %p553_p9, %p550_p8 }
  0x1c   :  { %558 = shalt.err (!%p555_p10)
}
  0x1d   :  { %s559_s1 = scalar_lea.vmem %s55_s16, 512  ;;  %p564_p12 = scmp.lt.s32.totalorder %s55_s16, %s55_s16 }
  0x1e   :  { %p560_p11 = scmp.ne.s32.totalorder %s55_s16, %s559_s1  ;;  %p565_p13 = scmp.lt.s32.totalorder %s559_s1, %s559_s1 }
  0x20   :  { %p566_p0 = por %p565_p13, %p564_p12 }
  0x22   :  { %p567_p1 = pnand %p566_p0, %p560_p11 }
  0x24   :  { %570 = shalt.err (!%p567_p1)
}
  0x25   :  { %60 = dma.hbm_to_vmem [thread:$0]  %s878_s3, 512, %s55_s16, [#allocation9], %s714_s11, %s714_s11, %s715_s12  }
  0x26   :  { %s571_s30 = scalar_lea.hbm %s880_s5, 512 }
  0x27   :  { %p572_p2 = scmp.ne.s32.totalorder %s880_s5, %s571_s30  ;;  %p575_p3 = scmp.lt.u32.totalorder %s571_s30, %s880_s5 }
  0x29   :  { %p577_p4 = pnand %p575_p3, %p572_p2 }
  0x2b   :  { %580 = shalt.err (!%p577_p4)
}
  0x2c   :  { %s581_s14 = scalar_lea.vmem %s77_s18, 512  ;;  %p586_p6 = scmp.lt.s32.totalorder %s77_s18, %s77_s18 }
  0x2d   :  { %p582_p5 = scmp.ne.s32.totalorder %s77_s18, %s581_s14  ;;  %p587_p7 = scmp.lt.s32.totalorder %s581_s14, %s581_s14 }
  0x2f   :  { %p588_p8 = por %p587_p7, %p586_p6 }
  0x31   :  { %p589_p9 = pnand %p588_p8, %p582_p5 }
  0x33   :  { %592 = shalt.err (!%p589_p9)
}
  0x34   :  { %82 = dma.hbm_to_vmem [thread:$0]  %s880_s5, 512, %s77_s18, [#allocation12], %s714_s11, %s714_s11, %s715_s12  }
  0x35   :  { %s718_s16 = smov [#allocation2]   ;;  %s719_s19 = smov [#allocation7]  }
  0x36   :  { %s23_s17 = sshll.u32 %s718_s16, 4  ;;  %s45_s20 = sshll.u32 %s719_s19, 4  ;;  %s24_s17 = int_to_ptr.vmem [resolvable:$true] %s23_s17  ;;  %s46_s20 = int_to_ptr.vmem [resolvable:$true] %s45_s20 }
  0x37   :  { %s593_s23 = scalar_lea.hbm %s875_s0, 64 }
  0x38   :  { %p594_p10 = scmp.ne.s32.totalorder %s875_s0, %s593_s23  ;;  %p597_p11 = scmp.lt.u32.totalorder %s593_s23, %s875_s0 }
  0x3a   :  { %p599_p12 = pnand %p597_p11, %p594_p10 }
  0x3c   :  { %602 = shalt.err (!%p599_p12)
}
  0x3d   :  { %s603_s5 = scalar_lea.vmem %s24_s17, 64  ;;  %p608_p0 = scmp.lt.s32.totalorder %s24_s17, %s24_s17 }
  0x3e   :  { %p604_p13 = scmp.ne.s32.totalorder %s24_s17, %s603_s5  ;;  %p609_p1 = scmp.lt.s32.totalorder %s603_s5, %s603_s5 }
  0x40   :  { %p610_p2 = por %p609_p1, %p608_p0 }
  0x42   :  { %p611_p3 = pnand %p610_p2, %p604_p13 }
  0x44   :  { %614 = shalt.err (!%p611_p3)
}
  0x45   :  { %26 = dma.hbm_to_vmem [thread:$0]  %s875_s0, 64, %s24_s17, [#allocation3]  }
  0x46   :  { %s615_s28 = scalar_lea.hbm %s877_s2, 16 }
  0x47   :  { %p616_p4 = scmp.ne.s32.totalorder %s877_s2, %s615_s28  ;;  %p619_p5 = scmp.lt.u32.totalorder %s615_s28, %s877_s2 }
  0x49   :  { %p621_p6 = pnand %p619_p5, %p616_p4 }
  0x4b   :  { %624 = shalt.err (!%p621_p6)
}
  0x4c   :  { %s625_s10 = scalar_lea.vmem %s46_s20, 16  ;;  %s629_s13 = scalar_lea.vmem %s46_s20, 32 }
  0x4d   :  { %p626_p7 = scmp.ne.s32.totalorder %s46_s20, %s625_s10  ;;  %p630_p8 = scmp.lt.s32.totalorder %s46_s20, %s46_s20 }
  0x4e   :  { %p631_p9 = scmp.lt.s32.totalorder %s629_s13, %s625_s10 }
  0x50   :  { %p632_p10 = por %p631_p9, %p630_p8 }
  0x52   :  { %p633_p11 = pnand %p632_p10, %p626_p7 }
  0x54   :  { %636 = shalt.err (!%p633_p11)
}
  0x55   :  { %48 = dma.hbm_to_vmem [thread:$0]  %s877_s2, 16, %s46_s20, [#allocation6]  }
  0x56   :  { %s720_s3 = smov [#allocation10]   ;;  %s721_s16 = smov [#allocation13]  }
  0x57   :  { %s67_s15 = sshll.u32 %s720_s3, 4  ;;  %s89_s17 = sshll.u32 %s721_s16, 4  ;;  %s68_s15 = int_to_ptr.vmem [resolvable:$true] %s67_s15  ;;  %s90_s17 = int_to_ptr.vmem [resolvable:$true] %s89_s17 }
  0x58   :  { %s637_s22 = scalar_lea.hbm %s879_s4, 16 }
  0x59   :  { %p638_p12 = scmp.ne.s32.totalorder %s879_s4, %s637_s22  ;;  %p641_p13 = scmp.lt.u32.totalorder %s637_s22, %s879_s4 }
  0x5b   :  { %p643_p0 = pnand %p641_p13, %p638_p12 }
  0x5d   :  { %646 = shalt.err (!%p643_p0)
}
  0x5e   :  { %s647_s2 = scalar_lea.vmem %s68_s15, 16  ;;  %s651_s20 = scalar_lea.vmem %s68_s15, 32 }
  0x5f   :  { %p648_p1 = scmp.ne.s32.totalorder %s68_s15, %s647_s2  ;;  %p652_p2 = scmp.lt.s32.totalorder %s68_s15, %s68_s15 }
  0x60   :  { %p653_p3 = scmp.lt.s32.totalorder %s651_s20, %s647_s2 }
  0x62   :  { %p654_p4 = por %p653_p3, %p652_p2 }
  0x64   :  { %p655_p5 = pnand %p654_p4, %p648_p1 }
  0x66   :  { %658 = shalt.err (!%p655_p5)
}
  0x67   :  { %70 = dma.hbm_to_vmem [thread:$0]  %s879_s4, 16, %s68_s15, [#allocation9]  }
  0x68   :  { %s659_s18 = scalar_lea.hbm %s881_s6, 16 }
  0x69   :  { %p660_p6 = scmp.ne.s32.totalorder %s881_s6, %s659_s18  ;;  %p663_p7 = scmp.lt.u32.totalorder %s659_s18, %s881_s6 }
  0x6b   :  { %p665_p8 = pnand %p663_p7, %p660_p6 }
  0x6d   :  { %668 = shalt.err (!%p665_p8)
}
  0x6e   :  { %s669_s8 = scalar_lea.vmem %s90_s17, 16  ;;  %s673_s9 = scalar_lea.vmem %s90_s17, 32 }
  0x6f   :  { %p670_p9 = scmp.ne.s32.totalorder %s90_s17, %s669_s8  ;;  %p674_p10 = scmp.lt.s32.totalorder %s90_s17, %s90_s17 }
  0x70   :  { %p675_p11 = scmp.lt.s32.totalorder %s673_s9, %s669_s8 }
  0x72   :  { %p676_p12 = por %p675_p11, %p674_p10 }
  0x74   :  { %p677_p13 = pnand %p676_p12, %p670_p9 }
  0x76   :  { %680 = shalt.err (!%p677_p13)
}
  0x77   :  { %92 = dma.hbm_to_vmem [thread:$0]  %s881_s6, 16, %s90_s17, [#allocation12]  }
  0x78   :  { %703 = dma.done.wait [#allocation3], 64  }
  0x79   :  { %704 = vsyncadd [#allocation3], 4294967232 }
  0x7a   :  { %705 = dma.done.wait [#allocation6], 1040  }
  0x7b   :  { %706 = vsyncadd [#allocation6], 4294966256 }
  0x7c   :  { %707 = dma.done.wait [#allocation9], 528  }
  0x7d   :  { %708 = vsyncadd [#allocation9], 4294966768 }
  0x7e   :  { %709 = dma.done.wait [#allocation12], 528  }
  0x7f   :  { %710 = vsyncadd [#allocation12], 4294966768  ;;  %v722_v0 = vmov 0.0   ;;  %vm723_vm0 = vmmov 0   ;;  %v511_v1 = vld [vmem:[#allocation5] sm:$0xff]   ;;  %v512_v2 = vld [vmem:[#allocation5 + $0x8] sm:$0xff]  }
  0x80   :  { %455 = vmatprep.subr.bf16.mxu0 %v722_v0  ;;  %471 = vmatprep.mubr.msk.bf16.mxu0 %vm723_vm0, %v722_v0  ;;  %v513_v3 = vld [vmem:[#allocation5 + $0x10] sm:$0xff]   ;;  %v519_v4 = vld [vmem:[#allocation8] sm:$0xff]   ;;  %v514_v5 = vld [vmem:[#allocation5 + $0x18] sm:$0xff]   ;;  %vm268_vm1 = vcmask 523264   ;;  %s724_s6 = smov [#allocation14]  }
  0x81   :  { %475 = vmatprep.subr.bf16.mxu1 %v722_v0  ;;  %483 = vmatprep.mubr.msk.bf16.mxu1 %vm723_vm0, %v722_v0  ;;  %v520_v6 = vld [vmem:[#allocation8 + $0x8] sm:$0xff]   ;;  %v515_v7 = vld [vmem:[#allocation5 + $0x20] sm:$0xff]   ;;  %v518_v10 = vld [vmem:[#allocation5 + $0x38] sm:$0xff]   ;;  %s403_s13 = sshll.u32 %s724_s6, 4  ;;  %s404_s13 = int_to_ptr.vmem [resolvable:$true] %s403_s13 }
  0x82   :  { %456 = vmatpush3.bf16.msra.mxu0 %v511_v1  ;;  %476 = vmatpush3.bf16.msra.mxu1 %v519_v4  ;;  %v516_v8 = vld [vmem:[#allocation5 + $0x28] sm:$0xff]   ;;  %v517_v9 = vld [vmem:[#allocation5 + $0x30] sm:$0xff]   ;;  %v115_v11 = vld [vmem:[#allocation2] sm:$0xf]  ;;  %s681_s0 = scalar_lea.vmem %s404_s13, 128  ;;  %p686_p1 = scmp.lt.s32.totalorder %s404_s13, %s404_s13 }
  0x83   :  { %457 = vmatprep.subr.bf16.mxu0 %v722_v0  ;;  %477 = vmatprep.subr.bf16.mxu1 %v722_v0  ;;  %v521_v12 = vld [vmem:[#allocation8 + $0x10] sm:$0xff]   ;;  %v522_v13 = vld [vmem:[#allocation8 + $0x18] sm:$0xff]   ;;  %v523_v21 = vld [vmem:[#allocation11] sm:$0xff]   ;;  %p682_p0 = scmp.ne.s32.totalorder %s404_s13, %s681_s0  ;;  %p687_p2 = scmp.lt.s32.totalorder %s681_s0, %s681_s0 }
  0x84   :  { %v415_v14 = vld [vmem:[#allocation7] ss:$0 sm:$0xff]  ;;  %v524_v23 = vld [vmem:[#allocation11 + $0x8] sm:$0xff]   ;;  %v525_v24 = vld [vmem:[#allocation11 + $0x10] sm:$0xff]  }
  0x85   :  { %v526_v25 = vld [vmem:[#allocation11 + $0x18] sm:$0xff]   ;;  %v430_v34 = vld [vmem:[#allocation13] ss:$0 sm:$0xff]  ;;  %p688_p3 = por %p687_p2, %p686_p1 }
  0x86   :  { %458 = vmatpush3.bf16.msra.mxu0 %v512_v2  ;;  %478 = vmatpush3.bf16.msra.mxu1 %v520_v6  ;;  %v424_v26 = vld [vmem:[#allocation10] ss:$0 sm:$0xff] }
  0x87   :  { %459 = vmatprep.subr.bf16.mxu0 %v722_v0  ;;  %479 = vmatprep.subr.bf16.mxu1 %v722_v0  ;;  %p689_p4 = pnand %p688_p3, %p682_p0 }
  0x8a   :  { %460 = vmatpush3.bf16.msra.mxu0 %v513_v3  ;;  %480 = vmatpush3.bf16.msra.mxu1 %v521_v12 }
  0x8b   :  { %461 = vmatprep.subr.bf16.mxu0 %v722_v0  ;;  %481 = vmatprep.subr.bf16.mxu1 %v722_v0 }
  0x8e   :  { %462 = vmatpush3.bf16.msra.mxu0 %v514_v5  ;;  %482 = vmatpush3.bf16.msra.mxu1 %v522_v13 }
  0x8f   :  { %463 = vmatprep.subr.bf16.mxu0 %v722_v0  ;;  %487 = vmatprep.subr.bf16.mxu1 %v722_v0 }
  0x92   :  { %464 = vmatpush3.bf16.msra.mxu0 %v515_v7 }
  0x93   :  { %465 = vmatprep.subr.bf16.mxu0 %v722_v0 }
  0x96   :  { %466 = vmatpush3.bf16.msra.mxu0 %v516_v8 }
  0x97   :  { %467 = vmatprep.subr.bf16.mxu0 %v722_v0 }
  0x9a   :  { %468 = vmatpush3.bf16.msra.mxu0 %v517_v9 }
  0x9b   :  { %469 = vmatprep.subr.bf16.mxu0 %v722_v0 }
  0x9e   :  { %470 = vmatpush3.bf16.msra.mxu0 %v518_v10 }
  0xa1   :  { %472 = vmatmul.mubr.bf16.vlgmr.msra.gmra.mrb[0].mxu0 %v115_v11 }
 0x174   :  { %v221_v15 = vpop.f32.mrb[0].mxu0 }
 0x175   :  { %v222_v16 = vadd.f32 %v415_v14, %v221_v15  ;;  %v473_v17 = vpop.f32.mrb[1].mxu0 }
 0x176   :  { %v224_v18 = vpop.f32.mrb[2].mxu0 }
 0x177   :  { %v227_v19 = vmax.f32 %v222_v16, 0.0  ;;  %v474_v20 = vpop.f32.mrb[3].mxu0 }
 0x179   :  { %v228_v22 = vpack.c.bf16 %v227_v19, %v227_v19 }
 0x17b   :  { %484 = vmatmul.mubr.msk.bf16.vlgmr.msra.gmra.mrb[0].mxu1 %vm268_vm1, %v228_v22 }
 0x17c   :  { %488 = vmatpush3.bf16.msra.mxu1 %v523_v21  ;;  %495 = vmatprep.mubr.msk.bf16.mxu1 %vm723_vm0, %v722_v0 }
 0x17d   :  { %489 = vmatprep.subr.bf16.mxu1 %v722_v0 }
 0x180   :  { %490 = vmatpush3.bf16.msra.mxu1 %v524_v23 }
 0x181   :  { %491 = vmatprep.subr.bf16.mxu1 %v722_v0 }
 0x184   :  { %492 = vmatpush3.bf16.msra.mxu1 %v525_v24 }
 0x185   :  { %493 = vmatprep.subr.bf16.mxu1 %v722_v0 }
 0x188   :  { %494 = vmatpush3.bf16.msra.mxu1 %v526_v25 }
 0x24e   :  { %v306_v27 = vpop.f32.mrb[0].mxu1 }
 0x24f   :  { %v307_v28 = vadd.f32 %v424_v26, %v306_v27  ;;  %v485_v29 = vpop.f32.mrb[1].mxu1 }
 0x250   :  { %v309_v30 = vpop.f32.mrb[2].mxu1 }
 0x251   :  { %v312_v31 = vmax.f32 %v307_v28, 0.0  ;;  %v486_v32 = vpop.f32.mrb[3].mxu1 }
 0x253   :  { %v313_v33 = vpack.c.bf16 %v312_v31, %v312_v31 }
 0x255   :  { %496 = vmatmul.mubr.msk.bf16.vlgmr.msra.gmra.mrb[4].mxu1 %vm268_vm1, %v313_v33 }
 0x328   :  { %v390_v35 = vpop.f32.mrb[4].mxu1 }
 0x329   :  { %v391_v36 = vadd.f32 %v430_v34, %v390_v35  ;;  %v497_v37 = vpop.f32.mrb[5].mxu1 }
 0x32a   :  { %v393_v38 = vpop.f32.mrb[6].mxu1 }
 0x32b   :  { %396 = vst [vmem:[#allocation14] sm:$0xff] %v391_v36  ;;  %v498_v39 = vpop.f32.mrb[7].mxu1 }
 0x32c   :  { %692 = shalt.err (!%p689_p4)
}
 0x32d   :  { %s693_s15 = scalar_lea.hbm %s882_s7, 128 }
 0x32e   :  { %p694_p5 = scmp.ne.s32.totalorder %s882_s7, %s693_s15  ;;  %p697_p6 = scmp.lt.u32.totalorder %s693_s15, %s882_s7 }
 0x330   :  { %p699_p7 = pnand %p697_p6, %p694_p5 }
 0x332   :  { %702 = shalt.err (!%p699_p7)
}
 0x333   :  { %406 = dma.vmem_to_hbm [thread:$0]  %s404_s13, 128, %s882_s7, [#allocation4]  }
 0x334   :  { %711 = dma.done.wait [#allocation4], 128  }
 0x335   :  { %712 = vsyncadd [#allocation4], 4294967168 }
 0x336   :  { %410 = vsyncpa [#allocation3], 1 }
 0x337   :  { %411 = vsyncpa [#allocation6], 1 }
 0x338   :  { %412 = vsyncpa [#allocation9], 1 }
 0x339   :  { %413 = vsyncpa [#allocation12], 1 }
 0x33a   :  { %414 = vsyncpa [#allocation4], 1 }

</bundles_post_ra>
